<compile_context>
chip_gen: v6e
topology: v6e:2x2x1
jax: 0.10.0
libtpu: 0.0.40
codegen_flags: <defaults>
</compile_context>

<pallas_src>
import jax
import jax.numpy as jnp
from jax.experimental import pallas as pl
from jax.experimental.pallas import tpu as pltpu


def _round_up(x, m):
    return ((x + m - 1) // m) * m


def prepare_gru_params(w_ih, w_hh, b_ih, b_hh, compute_dtype=jnp.bfloat16):
    """One-time (hoisted) parameter prep from PyTorch GRUCell layout.

    w_ih: (3H, D), w_hh: (3H, H), b_ih/b_hh: (3H,)  (gate order r, z, n).
    Returns:
      w_x:  (D, 4H) in `compute_dtype`, columns = [W_ir^T | W_iz^T | W_in^T | 0]
      w_h:  (H, 4H) in `compute_dtype`, columns = [W_hr^T | W_hz^T | 0 | W_hn^T]
      b_cat:(1, 4H) float32 = [b_ir+b_hr, b_iz+b_hz, b_in, b_hn]
    so that  g = x @ w_x + h @ w_h + b_cat  yields [pre_r | pre_z | gi_n | gh_n].
    """
    w_ih = jnp.asarray(w_ih, jnp.float32)
    w_hh = jnp.asarray(w_hh, jnp.float32)
    b_ih = jnp.asarray(b_ih, jnp.float32)
    b_hh = jnp.asarray(b_hh, jnp.float32)

    H3, D = w_ih.shape
    H = H3 // 3
    w_ir, w_iz, w_in = w_ih[:H], w_ih[H:2 * H], w_ih[2 * H:]
    w_hr, w_hz, w_hn = w_hh[:H], w_hh[H:2 * H], w_hh[2 * H:]

    w_x = jnp.concatenate(
        [w_ir.T, w_iz.T, w_in.T, jnp.zeros((D, H), jnp.float32)],
        axis=1).astype(compute_dtype)                                     # (D, 4H)
    w_h = jnp.concatenate(
        [w_hr.T, w_hz.T, jnp.zeros((H, H), jnp.float32), w_hn.T],
        axis=1).astype(compute_dtype)                                     # (H, 4H)

    b_cat = jnp.concatenate(
        [b_ih[:H] + b_hh[:H],
         b_ih[H:2 * H] + b_hh[H:2 * H],
         b_ih[2 * H:],
         b_hh[2 * H:]]).reshape(1, 4 * H).astype(jnp.float32)             # (1, 4H)
    return w_x, w_h, b_cat


def _gru_cell_kernel(x_ref, h_ref, wx_ref, wh_ref, b_ref, out_ref):
    """Two small MXU dots -> one lane-dense (bb, 4H=128) gate block; f32 gates."""
    H = h_ref.shape[-1]
    cdt = wx_ref.dtype

    h32 = h_ref[...].astype(jnp.float32)       # full-precision hidden for the blend

    g = (jnp.dot(x_ref[...].astype(cdt), wx_ref[...],
                 preferred_element_type=jnp.float32)
         + jnp.dot(h32.astype(cdt), wh_ref[...],
                   preferred_element_type=jnp.float32)
         + b_ref[...])                          # (bb, 4H) = [pre_r|pre_z|gi_n|gh_n]

    rz = jax.nn.sigmoid(g[:, :2 * H])           # one fused EUP block for r and z
    r = rz[:, :H]
    z = rz[:, H:]
    n = jnp.tanh(g[:, 2 * H:3 * H] + r * g[:, 3 * H:])

    out_ref[...] = ((1.0 - z) * n + z * h32).astype(out_ref.dtype)


def items_history_updater_forward(items_embeddings_history, users_embeddings_minus,
                                  w_x, w_h, b_cat, *, block_b=4096):
    """GRUCell forward: h_new = GRUCell(users_embeddings_minus, items_embeddings_history).

    w_x / w_h / b_cat must come from prepare_gru_params() (precomputed once).
    NOTE: at tiny batches (e.g. B=8) a pallas_call is pure launch overhead; in
    production batch many rows into one call so row tiles amortize grid cost.
    """
    h = items_embeddings_history          # (B, H), stored dtype, read exactly once
    x = users_embeddings_minus            # (B, D), stored dtype

    B, D = x.shape
    H = h.shape[-1]
    G = 4 * H
    assert w_x.shape == (D, G) and w_h.shape == (H, G) and b_cat.shape == (1, G)

    # Row tile: large enough to amortize ~0.35us/step grid overhead, but split
    # so the grid has >= 2 steps when B allows (both v7x TensorCores busy).
    bb = max(8, min(_round_up(block_b, 8), _round_up(pl.cdiv(B, 2), 8)))
    grid = (pl.cdiv(B, bb),)              # ragged last tile: Pallas masks OOB rows

    return pl.pallas_call(
        _gru_cell_kernel,
        out_shape=jax.ShapeDtypeStruct((B, H), h.dtype),
        grid_spec=pltpu.PrefetchScalarGridSpec(
            num_scalar_prefetch=0,
            grid=grid,
            in_specs=[
                pl.BlockSpec((bb, D), lambda i: (i, 0)),   # x row tile
                pl.BlockSpec((bb, H), lambda i: (i, 0)),   # h row tile (stored dtype)
                pl.BlockSpec((D, G), lambda i: (0, 0)),    # w_x (resident)
                pl.BlockSpec((H, G), lambda i: (0, 0)),    # w_h (resident)
                pl.BlockSpec((1, G), lambda i: (0, 0)),    # fused bias (resident)
            ],
            out_specs=pl.BlockSpec((bb, H), lambda i: (i, 0)),
        ),
        compiler_params=pltpu.CompilerParams(
            dimension_semantics=("parallel",),              # batch axis -> 2 TCs on v7x
            vmem_limit_bytes=32 * 1024 * 1024),             # headroom vs v5e 16 MiB default
    )(x, h, w_x, w_h, b_cat)


def _reference_gru_cell(h, x, w_ih, w_hh, b_ih, b_hh, matmul_dtype=jnp.float32):
    """Pure-JAX reference mirroring torch.nn.GRUCell (optionally bf16 matmuls)."""
    H = h.shape[-1]
    xm = x.astype(matmul_dtype)
    hm = h.astype(matmul_dtype)
    gi = jnp.dot(xm, w_ih.T.astype(matmul_dtype),
                 preferred_element_type=jnp.float32) + b_ih
    gh = jnp.dot(hm, w_hh.T.astype(matmul_dtype),
                 preferred_element_type=jnp.float32) + b_hh
    gi_r, gi_z, gi_n = gi[:, :H], gi[:, H:2 * H], gi[:, 2 * H:]
    gh_r, gh_z, gh_n = gh[:, :H], gh[:, H:2 * H], gh[:, 2 * H:]
    r = jax.nn.sigmoid(gi_r + gh_r)
    z = jax.nn.sigmoid(gi_z + gh_z)
    n = jnp.tanh(gi_n + r * gh_n)
    return (1.0 - z) * n + z * h.astype(jnp.float32)


if __name__ == "__main__":
    # Small shapes consistent with the module:
    #   nodes_dim = 64 -> input_size = 64, hidden_size = 32, batch = 8
    batch = 8
    nodes_dim = 64
    hidden = nodes_dim // 2

    key = jax.random.PRNGKey(0)
    k_h, k_x, k_wih, k_whh, k_bih, k_bhh = jax.random.split(key, 6)

    items_embeddings_history = jax.random.normal(k_h, (batch, hidden), jnp.float32)
    users_embeddings_minus = jax.random.normal(k_x, (batch, nodes_dim), jnp.float32)

    # nn.GRUCell-shaped params, U(-1/sqrt(H), 1/sqrt(H)) like PyTorch.
    bound = 1.0 / jnp.sqrt(jnp.float32(hidden))
    w_ih = jax.random.uniform(k_wih, (3 * hidden, nodes_dim), jnp.float32, -bound, bound)
    w_hh = jax.random.uniform(k_whh, (3 * hidden, hidden), jnp.float32, -bound, bound)
    b_ih = jax.random.uniform(k_bih, (3 * hidden,), jnp.float32, -bound, bound)
    b_hh = jax.random.uniform(k_bhh, (3 * hidden,), jnp.float32, -bound, bound)

    ref_f32 = _reference_gru_cell(items_embeddings_history, users_embeddings_minus,
                                  w_ih, w_hh, b_ih, b_hh,
                                  matmul_dtype=jnp.float32)

    # ---- float32 matmul path: check against the torch.nn.GRUCell math ----
    wx32, wh32, b32 = prepare_gru_params(w_ih, w_hh, b_ih, b_hh,
                                         compute_dtype=jnp.float32)
    out_f32 = items_history_updater_forward(items_embeddings_history,
                                             users_embeddings_minus,
                                             wx32, wh32, b32)
    out_f32 = jax.block_until_ready(out_f32)
    assert out_f32.shape == (batch, hidden)
    assert jnp.allclose(out_f32, ref_f32, atol=5e-3, rtol=5e-3), \
        "Pallas GRUCell (f32 matmul) mismatch vs reference"

    # ---- bf16 matmul path (default; v6e/v7x MXU fast path) ----
    wx16, wh16, b16 = prepare_gru_params(w_ih, w_hh, b_ih, b_hh,
                                         compute_dtype=jnp.bfloat16)
    out_bf16 = items_history_updater_forward(items_embeddings_history,
                                              users_embeddings_minus,
                                              wx16, wh16, b16)
    out_bf16 = jax.block_until_ready(out_bf16)
    ref_bf16 = _reference_gru_cell(items_embeddings_history, users_embeddings_minus,
                                   w_ih, w_hh, b_ih, b_hh,
                                   matmul_dtype=jnp.bfloat16)
    assert jnp.allclose(out_bf16, ref_bf16, atol=1e-2, rtol=1e-2), \
        "Pallas GRUCell (bf16 matmul) mismatch vs matching-precision reference"
    # Sanity: bf16 matmul path stays close to the exact f32 result.
    assert float(jnp.max(jnp.abs(out_bf16 - ref_f32))) < 5e-2

    print("KERNEL_OK")
</pallas_src>

<mosaic_0001>
module attributes {stable_mosaic.version = 11 : i64} {
  func.func @_gru_cell_kernel(%arg0: i32, %arg1: memref<8x64xf32, #tpu.memory_space<vmem>>, %arg2: memref<8x32xf32, #tpu.memory_space<vmem>>, %arg3: memref<64x128xf32, #tpu.memory_space<vmem>>, %arg4: memref<32x128xf32, #tpu.memory_space<vmem>>, %arg5: memref<1x128xf32, #tpu.memory_space<vmem>>, %arg6: memref<8x32xf32, #tpu.memory_space<vmem>>) attributes {dimension_semantics = [#tpu.dimension_semantics<parallel>], iteration_bounds = array<i64: 1>, scalar_prefetch = 0 : i64, scratch_operands = 0 : i64, tpu.core_type = #tpu.core_type<tc>, window_params = [{transform_indices = @transform_0, window_bounds = array<i64: 8, 64>}, {transform_indices = @transform_1, window_bounds = array<i64: 8, 32>}, {pipeline_mode = #tpu.pipeline_mode<synchronous>, transform_indices = @transform_2, window_bounds = array<i64: 64, 128>}, {pipeline_mode = #tpu.pipeline_mode<synchronous>, transform_indices = @transform_3, window_bounds = array<i64: 32, 128>}, {pipeline_mode = #tpu.pipeline_mode<synchronous>, transform_indices = @transform_4, window_bounds = array<i64: 1, 128>}, {transform_indices = @transform_5, window_bounds = array<i64: 8, 32>}]} {
    %c0 = arith.constant 0 : index
    %c0_0 = arith.constant 0 : index
    %0 = vector.load %arg2[%c0, %c0_0] : memref<8x32xf32, #tpu.memory_space<vmem>>, vector<8x32xf32>
    %c0_1 = arith.constant 0 : index
    %c0_2 = arith.constant 0 : index
    %1 = vector.load %arg1[%c0_1, %c0_2] : memref<8x64xf32, #tpu.memory_space<vmem>>, vector<8x64xf32>
    %c0_3 = arith.constant 0 : index
    %c0_4 = arith.constant 0 : index
    %2 = vector.load %arg3[%c0_3, %c0_4] : memref<64x128xf32, #tpu.memory_space<vmem>>, vector<64x128xf32>
    %cst = arith.constant dense<0.000000e+00> : vector<8x128xf32>
    %3 = tpu.matmul %1, %2, %cst {dimension_numbers = #tpu.dot_dimension_numbers<[1], [0], [0], [1], [0, 0, 1, 1], [], []>} : vector<8x64xf32>, vector<64x128xf32>, vector<8x128xf32> -> vector<8x128xf32>
    %c0_5 = arith.constant 0 : index
    %c0_6 = arith.constant 0 : index
    %4 = vector.load %arg4[%c0_5, %c0_6] : memref<32x128xf32, #tpu.memory_space<vmem>>, vector<32x128xf32>
    %cst_7 = arith.constant dense<0.000000e+00> : vector<8x128xf32>
    %5 = tpu.matmul %0, %4, %cst_7 {dimension_numbers = #tpu.dot_dimension_numbers<[1], [0], [0], [1], [0, 0, 1, 1], [], []>} : vector<8x32xf32>, vector<32x128xf32>, vector<8x128xf32> -> vector<8x128xf32>
    %6 = arith.addf %3, %5 : vector<8x128xf32>
    %c0_8 = arith.constant 0 : index
    %c0_9 = arith.constant 0 : index
    %7 = vector.load %arg5[%c0_8, %c0_9] : memref<1x128xf32, #tpu.memory_space<vmem>>, vector<1x128xf32>
    %8 = vector.broadcast %7 : vector<1x128xf32> to vector<8x128xf32>
    %9 = arith.addf %6, %8 : vector<8x128xf32>
    %10 = vector.extract_strided_slice %9 {offsets = [0, 0], sizes = [8, 64], strides = [1, 1]} : vector<8x128xf32> to vector<8x64xf32>
    %11 = arith.negf %10 : vector<8x64xf32>
    %12 = math.exp %11 : vector<8x64xf32>
    %cst_10 = arith.constant 1.000000e+00 : f32
    %13 = vector.broadcast %cst_10 : f32 to vector<8x64xf32>
    %14 = arith.addf %13, %12 : vector<8x64xf32>
    %15 = arith.divf %13, %14 : vector<8x64xf32>
    %16 = vector.extract_strided_slice %15 {offsets = [0, 0], sizes = [8, 32], strides = [1, 1]} : vector<8x64xf32> to vector<8x32xf32>
    %17 = vector.extract_strided_slice %15 {offsets = [0, 32], sizes = [8, 32], strides = [1, 1]} : vector<8x64xf32> to vector<8x32xf32>
    %18 = vector.extract_strided_slice %9 {offsets = [0, 64], sizes = [8, 32], strides = [1, 1]} : vector<8x128xf32> to vector<8x32xf32>
    %19 = vector.extract_strided_slice %9 {offsets = [0, 96], sizes = [8, 32], strides = [1, 1]} : vector<8x128xf32> to vector<8x32xf32>
    %20 = arith.mulf %16, %19 : vector<8x32xf32>
    %21 = arith.addf %18, %20 : vector<8x32xf32>
    %22 = math.tanh %21 : vector<8x32xf32>
    %cst_11 = arith.constant 1.000000e+00 : f32
    %23 = vector.broadcast %cst_11 : f32 to vector<8x32xf32>
    %24 = arith.subf %23, %17 : vector<8x32xf32>
    %25 = arith.mulf %24, %22 : vector<8x32xf32>
    %26 = arith.mulf %17, %0 : vector<8x32xf32>
    %27 = arith.addf %25, %26 : vector<8x32xf32>
    %c0_12 = arith.constant 0 : index
    %c0_13 = arith.constant 0 : index
    %28 = vector.load %arg6[%c0_12, %c0_13] : memref<8x32xf32, #tpu.memory_space<vmem>>, vector<8x32xf32>
    tpu.vector_store %arg6[%c0_12, %c0_13], %27 {strides = array<i32>} : memref<8x32xf32, #tpu.memory_space<vmem>>, vector<8x32xf32>,
    return
  }
  func.func @transform_0(%arg0: i32) -> (i32, i32) {
    %c0_i32 = arith.constant 0 : i32
    %c0_i32_0 = arith.constant 0 : i32
    return %arg0, %c0_i32 : i32, i32
  }
  func.func @transform_1(%arg0: i32) -> (i32, i32) {
    %c0_i32 = arith.constant 0 : i32
    %c0_i32_0 = arith.constant 0 : i32
    return %arg0, %c0_i32 : i32, i32
  }
  func.func @transform_2(%arg0: i32) -> (i32, i32) {
    %c0_i32 = arith.constant 0 : i32
    %c0_i32_0 = arith.constant 0 : i32
    %c0_i32_1 = arith.constant 0 : i32
    return %c0_i32, %c0_i32_0 : i32, i32
  }
  func.func @transform_3(%arg0: i32) -> (i32, i32) {
    %c0_i32 = arith.constant 0 : i32
    %c0_i32_0 = arith.constant 0 : i32
    %c0_i32_1 = arith.constant 0 : i32
    return %c0_i32, %c0_i32_0 : i32, i32
  }
  func.func @transform_4(%arg0: i32) -> (i32, i32) {
    %c0_i32 = arith.constant 0 : i32
    %c0_i32_0 = arith.constant 0 : i32
    %c0_i32_1 = arith.constant 0 : i32
    return %c0_i32, %c0_i32_0 : i32, i32
  }
  func.func @transform_5(%arg0: i32) -> (i32, i32) {
    %c0_i32 = arith.constant 0 : i32
    %c0_i32_0 = arith.constant 0 : i32
    return %arg0, %c0_i32 : i32, i32
  }
}

</mosaic_0001>

<bundles_post_ra>
// kernel: tpu_custom_call.1
= control target key start
LH: loop header
LB: loop body
LE: loop exit
PB: predicated region body
PF: predicated region fallthrough
CT: control target
= control target key end

     0   :  { %10 = vsyncpa [#allocation3], 0  ;;  %s528_s0 = inlined_call_operand.hbm [shape: f32[8,64], index: 0, kind: input, shape index: {}]   ;;  %s529_s1 = inlined_call_operand.hbm [shape: f32[8,32], index: 1, kind: input, shape index: {}]   ;;  %s530_s2 = inlined_call_operand.hbm [shape: f32[64,128], index: 2, kind: input, shape index: {}]   ;;  %s531_s3 = inlined_call_operand.hbm [shape: f32[32,128], index: 3, kind: input, shape index: {}]   ;;  %s532_s4 = inlined_call_operand.vmem [shape: f32[1,128], index: 4, kind: input, shape index: {}]   ;;  %s533_s5 = inlined_call_operand.hbm [shape: f32[8,32], index: 5, kind: output, shape index: {}]  }
   0x1   :  { %11 = vsyncpa [#allocation6], 0 }
   0x2   :  { %12 = vsyncpa [#allocation9], 0 }
   0x3   :  { %13 = vsyncpa [#allocation4], 0  ;;  %s466_s18 = smov [#allocation5]   ;;  %s467_s20 = smov [#allocation2]  }
   0x4   :  { %s30_s19 = sshll.u32 %s466_s18, 4  ;;  %s20_s21 = sshll.u32 %s467_s20, 4  ;;  %s31_s19 = int_to_ptr.vmem [resolvable:$true] %s30_s19  ;;  %s21_s21 = int_to_ptr.vmem [resolvable:$true] %s20_s21 }
   0x5   :  { %s366_s22 = scalar_lea.vmem %s31_s19, 128  ;;  %p371_p1 = scmp.lt.s32.totalorder %s31_s19, %s31_s19 }
   0x6   :  { %p367_p0 = scmp.ne.s32.totalorder %s31_s19, %s366_s22  ;;  %p372_p2 = scmp.lt.s32.totalorder %s366_s22, %s366_s22 }
   0x8   :  { %p373_p3 = por %p372_p2, %p371_p1 }
   0xa   :  { %p374_p4 = pnand %p373_p3, %p367_p0 }
   0xc   :  { %377 = shalt.err (!%p374_p4)
}
   0xd   :  { %33 = dma.hbm_to_vmem [thread:$0]  %s529_s1, 128, %s31_s19, [#allocation6]  }
   0xe   :  { %s386_s25 = scalar_lea.vmem %s21_s21, 128  ;;  %p391_p6 = scmp.lt.s32.totalorder %s21_s21, %s21_s21 }
   0xf   :  { %p387_p5 = scmp.ne.s32.totalorder %s21_s21, %s386_s25  ;;  %p392_p7 = scmp.lt.s32.totalorder %s386_s25, %s386_s25 }
  0x11   :  { %p393_p8 = por %p392_p7, %p391_p6 }
  0x13   :  { %p394_p9 = pnand %p393_p8, %p387_p5 }
  0x15   :  { %397 = shalt.err (!%p394_p9)
}
  0x16   :  { %23 = dma.hbm_to_vmem [thread:$0]  %s528_s0, 128, %s21_s21, [#allocation3]  }
  0x17   :  { %s468_s28 = smov [#allocation7]  }
  0x18   :  { %s39_s29 = sshll.u32 %s468_s28, 4  ;;  %s40_s29 = int_to_ptr.vmem [resolvable:$true] %s39_s29 }
  0x19   :  { %s406_s30 = scalar_lea.vmem %s40_s29, 1024  ;;  %p411_p11 = scmp.lt.s32.totalorder %s40_s29, %s40_s29 }
  0x1a   :  { %p407_p10 = scmp.ne.s32.totalorder %s40_s29, %s406_s30  ;;  %p412_p12 = scmp.lt.s32.totalorder %s406_s30, %s406_s30 }
  0x1c   :  { %p413_p13 = por %p412_p12, %p411_p11 }
  0x1e   :  { %p414_p0 = pnand %p413_p13, %p407_p10 }
  0x20   :  { %417 = shalt.err (!%p414_p0)
}
  0x21   :  { %s469_s1 = smov 128   ;;  %s470_s6 = smov 8  }
  0x22   :  { %45 = dma.hbm_to_vmem [thread:$0]  %s530_s2, 1024, %s40_s29, [#allocation6], %s469_s1, %s469_s1, %s470_s6  }
  0x23   :  { %s471_s9 = smov [#allocation8]  }
  0x24   :  { %s51_s10 = sshll.u32 %s471_s9, 4  ;;  %s52_s10 = int_to_ptr.vmem [resolvable:$true] %s51_s10 }
  0x25   :  { %s426_s0 = scalar_lea.vmem %s52_s10, 512  ;;  %p431_p2 = scmp.lt.s32.totalorder %s52_s10, %s52_s10 }
  0x26   :  { %p427_p1 = scmp.ne.s32.totalorder %s52_s10, %s426_s0  ;;  %p432_p3 = scmp.lt.s32.totalorder %s426_s0, %s426_s0 }
  0x28   :  { %p433_p4 = por %p432_p3, %p431_p2 }
  0x2a   :  { %p434_p5 = pnand %p433_p4, %p427_p1 }
  0x2c   :  { %437 = shalt.err (!%p434_p5)
}
  0x2d   :  { %57 = dma.hbm_to_vmem [thread:$0]  %s531_s3, 512, %s52_s10, [#allocation9], %s469_s1, %s469_s1, %s470_s6  }
  0x2e   :  { %458 = dma.done.wait [#allocation3], 128  }
  0x2f   :  { %459 = vsyncadd [#allocation3], 4294967168 }
  0x30   :  { %460 = dma.done.wait [#allocation6], 1152  }
  0x31   :  { %461 = vsyncadd [#allocation6], 4294966144 }
  0x32   :  { %462 = dma.done.wait [#allocation9], 512  }
  0x33   :  { %463 = vsyncadd [#allocation9], 4294966784  ;;  %v472_v0 = vmov 0.0   ;;  %vm473_vm0 = vmmov 0   ;;  %v81_v1 = vld [vmem:[#allocation7 + $0x38] sm:$0xff]  ;;  %v80_v2 = vld [vmem:[#allocation7 + $0x30] sm:$0xff] }
  0x34   :  { %321 = vmatprep.subr.mxu1 %v472_v0  ;;  %310 = vmatprep.subr.mxu0 %v472_v0  ;;  %v85_v3 = vld [vmem:[#allocation8 + $0x18] sm:$0xff]  ;;  %v84_v4 = vld [vmem:[#allocation8 + $0x10] sm:$0xff]  ;;  %v79_v5 = vld [vmem:[#allocation7 + $0x28] sm:$0xff]  ;;  %vm86_vm1 = vcmask 261120   ;;  %vm160_vm2 = vcmask 523264   ;;  %s474_s13 = smov 32  }
  0x35   :  { %318 = vmatprep.mubr.msk.f32.mxu0 %vm473_vm0, %v472_v0  ;;  %337 = vmatprep.mubr.msk.f32.mxu1 %vm473_vm0, %v472_v0  ;;  %v83_v6 = vld [vmem:[#allocation8 + $0x8] sm:$0xff]  ;;  %v78_v7 = vld [vmem:[#allocation7 + $0x20] sm:$0xff]  ;;  %v77_v9 = vld [vmem:[#allocation7 + $0x18] sm:$0xff]  ;;  %s475_s14 = smov 64   ;;  %s477_s15 = smov [#allocation10]  }
  0x36   :  { %322 = vmatpush3.msra.mxu1 %v81_v1  ;;  %311 = vmatpush3.msra.mxu0 %v85_v3  ;;  %v82_v8 = vld [vmem:[#allocation8] sm:$0xff]  ;;  %v72_v10 = vld [vmem:[#allocation5] sm:$0xff]  ;;  %v76_v11 = vld [vmem:[#allocation7 + $0x10] sm:$0xff]  ;;  %s281_s16 = sshll.u32 %s477_s15, 4  ;;  %s282_s16 = int_to_ptr.vmem [resolvable:$true] %s281_s16 }
  0x37   :  { %323 = vmatprep.subr.mxu1 %v472_v0  ;;  %312 = vmatprep.subr.mxu0 %v472_v0  ;;  %v75_v12 = vld [vmem:[#allocation7 + $0x8] sm:$0xff]  ;;  %v74_v13 = vld [vmem:[#allocation7] sm:$0xff]  ;;  %v73_v14 = vld [vmem:[#allocation2] sm:$0xff]  ;;  %s438_s17 = scalar_lea.vmem %s282_s16, 128  ;;  %p443_p7 = scmp.lt.s32.totalorder %s282_s16, %s282_s16 }
  0x38   :  { %324 = vmatpush3.msra.mxu1 %v80_v2  ;;  %313 = vmatpush3.msra.mxu0 %v84_v4  ;;  %v294_v18 = vld [vmem:[%s532_s4] ss:$0 sm:$0xff]  ;;  %s476_s4 = smov 96   ;;  %p439_p6 = scmp.ne.s32.totalorder %s282_s16, %s438_s17 }
  0x39   :  { %325 = vmatprep.subr.mxu1 %v472_v0  ;;  %314 = vmatprep.subr.mxu0 %v472_v0  ;;  %p444_p8 = scmp.lt.s32.totalorder %s438_s17, %s438_s17 }
  0x3a   :  { %326 = vmatpush3.msra.mxu1 %v79_v5  ;;  %315 = vmatpush3.msra.mxu0 %v83_v6 }
  0x3b   :  { %327 = vmatprep.subr.mxu1 %v472_v0  ;;  %316 = vmatprep.subr.mxu0 %v472_v0  ;;  %p445_p9 = por %p444_p8, %p443_p7 }
  0x3c   :  { %328 = vmatpush3.msra.mxu1 %v78_v7  ;;  %317 = vmatpush3.msra.mxu0 %v82_v8 }
  0x3d   :  { %329 = vmatprep.subr.mxu1 %v472_v0  ;;  %319 = vmatmul.mubr.msk.f32.vlgmr.msra.gmra.mxu0 %vm86_vm1, %v72_v10  ;;  %p446_p10 = pnand %p445_p9, %p439_p6 }
  0x3e   :  { %330 = vmatpush3.msra.mxu1 %v77_v9 }
  0x3f   :  { %331 = vmatprep.subr.mxu1 %v472_v0 }
  0x40   :  { %332 = vmatpush3.msra.mxu1 %v76_v11 }
  0x41   :  { %333 = vmatprep.subr.mxu1 %v472_v0 }
  0x42   :  { %334 = vmatpush3.msra.mxu1 %v75_v12 }
  0x43   :  { %335 = vmatprep.subr.mxu1 %v472_v0 }
  0x44   :  { %336 = vmatpush3.msra.mxu1 %v74_v13 }
  0x45   :  { %338 = vmatmul.mubr.msk.f32.vlgmr.msra.gmra.mxu1 %vm160_vm2, %v73_v14 }
  0xfd   :  { %v156_v15 = vpop.f32.mrf.mxu0 }
  0xff   :  { %v320_v16 = vpop.f32.mrf.mxu0 }
 0x105   :  { %v230_v17 = vpop.f32.mrf.mxu1 }
 0x106   :  { %v231_v19 = vadd.f32 %v230_v17, %v156_v15 }
 0x107   :  { %v339_v20 = vpop.f32.mrf.mxu1 }
 0x108   :  { %v241_v21 = vadd.f32 %v294_v18, %v231_v19 }
 0x10a   :  { %249 = vrot.lane.b32.xlu0 %v241_v21, %s474_s13  ;;  %v295_v22 = vmul.f32 -1.442695, %v241_v21 }
 0x10c   :  { %352 = vpow2.f32 %v295_v22 }
 0x119   :  { %v353_v23 = vpop.eup %352 }
 0x11a   :  { %v245_v24 = vadd.f32 1.0, %v353_v23 }
 0x11c   :  { %354 = vrcp.f32 %v245_v24 }
 0x129   :  { %v355_v25 = vpop.eup %354 }
 0x12a   :  { %v259_v32 = vsub.f32 1.0, %v355_v25 }
 0x17c   :  { %v250_v26 = vpop.permute.xlu0 %249 }
 0x17d   :  { %v252_v27 = vmul.f32 %v355_v25, %v250_v26 }
 0x17f   :  { %254 = vrot.lane.b32.xlu0 %v252_v27, %s475_s14 }
 0x1f1   :  { %v255_v28 = vpop.permute.xlu0 %254 }
 0x1f2   :  { %v257_v29 = vadd.f32 %v255_v28, %v241_v21 }
 0x1f4   :  { %356 = vtanh.f32 %v257_v29 }
 0x201   :  { %v357_v30 = vpop.eup %356 }
 0x202   :  { %261 = vrot.lane.b32.xlu1 %v357_v30, %s476_s4 }
 0x206   :  { %265 = vrot.lane.b32.xlu1 %v72_v10, %s474_s13 }
 0x274   :  { %v262_v31 = vpop.permute.xlu1 %261 }
 0x275   :  { %v264_v34 = vmul.f32 %v262_v31, %v259_v32 }
 0x278   :  { %v266_v33 = vpop.permute.xlu1 %265 }
 0x279   :  { %v268_v35 = vmul.f32 %v355_v25, %v266_v33 }
 0x27b   :  { %v269_v36 = vadd.f32 %v268_v35, %v264_v34 }
 0x27d   :  { %271 = vrot.lane.b32.xlu0 %v269_v36, %s476_s4 }
 0x2ef   :  { %v272_v37 = vpop.permute.xlu0 %271 }
 0x2f0   :  { %274 = vst.msk [vmem:[#allocation10] sm:$0xff] %vm86_vm1, %v272_v37 }
 0x2f1   :  { %449 = shalt.err (!%p446_p10)
}
 0x2f2   :  { %284 = dma.vmem_to_hbm [thread:$0]  %s282_s16, 128, %s533_s5, [#allocation4]  }
 0x2f3   :  { %464 = dma.done.wait [#allocation4], 128  }
 0x2f4   :  { %465 = vsyncadd [#allocation4], 4294967168 }
 0x2f5   :  { %288 = vsyncpa [#allocation3], 1 }
 0x2f6   :  { %289 = vsyncpa [#allocation6], 1 }
 0x2f7   :  { %290 = vsyncpa [#allocation9], 1 }
 0x2f8   :  { %291 = vsyncpa [#allocation4], 1 }

</bundles_post_ra>
